<compile_context>
chip_gen: v5e
topology: v5e:2x2
jax: 0.10.0
libtpu: 0.0.40
codegen_flags: <defaults>
</compile_context>

<pallas_src>
import math
from functools import partial

import jax
import jax.numpy as jnp
from jax.experimental import pallas as pl
from jax.experimental.pallas import tpu as pltpu


def make_pe_table(d_model: int, max_len: int = 5000) -> jnp.ndarray:
    """Replicates the __init__ buffer: pe[max_len, 1, d_model]."""
    position = jnp.arange(max_len, dtype=jnp.float32)[:, None]            # [L, 1]
    div_term = jnp.exp(
        jnp.arange(0, d_model, 2, dtype=jnp.float32) * (-math.log(10000.0) / d_model)
    )                                                                     # [D/2]
    ang = position * div_term                                             # [L, D/2]
    pe = jnp.zeros((max_len, 1, d_model), dtype=jnp.float32)
    pe = pe.at[:, 0, 0::2].set(jnp.sin(ang))
    pe = pe.at[:, 0, 1::2].set(jnp.cos(ang))
    return pe


# --------------------------------------------------------------------------
# Kernels.  x/out tiles are (TS, B*D) lane-dense slabs; pe tile is (TS, D).
# --------------------------------------------------------------------------
def _pe_add_kernel(x_ref, pe_ref, o_ref, *, batch: int):
    pe_row = pe_ref[...]
    pe_b = jnp.concatenate([pe_row] * batch, axis=-1) if batch > 1 else pe_row
    o_ref[...] = (x_ref[...] + pe_b).astype(o_ref.dtype)


def _pe_add_dropout_kernel(x_ref, pe_ref, bits_ref, o_ref, *,
                           batch: int, threshold: int, scale: float):
    pe_row = pe_ref[...]
    pe_b = jnp.concatenate([pe_row] * batch, axis=-1) if batch > 1 else pe_row
    y = x_ref[...] + pe_b
    keep = bits_ref[...] >= jnp.uint32(threshold)      # P(drop) = threshold / 2^32 ~= p
    o_ref[...] = jnp.where(keep, y * scale, 0.0).astype(o_ref.dtype)


def _pick_tile_rows(S: int, BD: int, D: int, itemsize: int, with_bits: bool) -> int:
    """Largest multiple-of-8 row tile keeping the double-buffered footprint small."""
    per_row = BD * itemsize * 2 + D * itemsize          # x tile + out tile + pe tile
    if with_bits:
        per_row += BD * 4                                # uint32 mask bits
    budget = 8 * 1024 * 1024                             # per buffer set (~16 MiB x2-buffered)
    ts = max(1, budget // per_row)
    if ts >= S:
        return S                                         # full extent is always legal
    return max(8, (ts // 8) * 8)                         # keep sublane alignment


def positional_encoding(x, pe, *, p: float = 0.1, training: bool = True,
                        rng_key=None, tile_rows=None):
    """x: [S, B, D]; pe: [max_len, 1, D].  Returns dropout(x + pe[:S])."""
    S, B, D = x.shape
    BD = B * D
    p = float(p)

    apply_dropout = bool(training) and p > 0.0
    if apply_dropout and p >= 1.0:                       # torch: Dropout(p=1) zeros everything
        return jnp.zeros_like(x)

    x2 = x.reshape(S, BD)                                # free, row-major contiguous
    pe2 = pe[:, 0, :].astype(x.dtype)                    # [max_len, D]; dtype-matched, no [:S] slice

    itemsize = jnp.dtype(x.dtype).itemsize
    ts = tile_rows if tile_rows is not None else _pick_tile_rows(S, BD, D, itemsize, apply_dropout)
    grid = (pl.cdiv(S, ts),)

    x_spec = pl.BlockSpec((ts, BD), lambda i: (i, 0))
    pe_spec = pl.BlockSpec((ts, D), lambda i: (i, 0))
    out_spec = pl.BlockSpec((ts, BD), lambda i: (i, 0))

    bytes_accessed = 2 * S * BD * itemsize + S * D * itemsize
    flops = S * BD
    inputs = [x2, pe2]
    in_specs = [x_spec, pe_spec]

    if apply_dropout:
        if rng_key is None:
            rng_key = jax.random.PRNGKey(0)
        bits = jax.random.bits(rng_key, (S, BD), dtype=jnp.uint32)
        threshold = min(int(round(p * 2.0 ** 32)), 2 ** 32 - 1)
        kernel = partial(_pe_add_dropout_kernel, batch=B,
                         threshold=threshold, scale=1.0 / (1.0 - p))
        inputs.append(bits)
        in_specs.append(pl.BlockSpec((ts, BD), lambda i: (i, 0)))
        bytes_accessed += S * BD * 4
        flops += 2 * S * BD
    else:
        kernel = partial(_pe_add_kernel, batch=B)

    out2 = pl.pallas_call(
        kernel,
        out_shape=jax.ShapeDtypeStruct((S, BD), x.dtype),
        grid=grid,
        in_specs=in_specs,
        out_specs=out_spec,
        compiler_params=pltpu.CompilerParams(
            dimension_semantics=("parallel",),           # independent tiles -> megacore-shardable
            vmem_limit_bytes=32 * 1024 * 1024,
        ),
        cost_estimate=pl.CostEstimate(
            flops=flops, transcendentals=0, bytes_accessed=bytes_accessed),
    )(*inputs)

    return out2.reshape(S, B, D)


if __name__ == "__main__":
    # Small shapes consistent with the module's [seq_len, batch, d_model] input.
    S, B, D = 8, 2, 32
    P_DROP = 0.1

    key = jax.random.PRNGKey(0)
    kx, kdrop = jax.random.split(key)
    x = jax.random.normal(kx, (S, B, D), dtype=jnp.float32)
    pe = make_pe_table(d_model=D, max_len=128)

    # Eval-mode (dropout = identity): must match x + pe[:S] exactly.
    out_eval = jax.block_until_ready(
        positional_encoding(x, pe, p=P_DROP, training=False)
    )
    ref_eval = x + pe[:S]
    assert jnp.allclose(out_eval, ref_eval, atol=1e-6), "eval-mode mismatch"

    # Train-mode: every element is either dropped (0) or scaled by 1/(1-p).
    out_train = jax.block_until_ready(
        positional_encoding(x, pe, p=P_DROP, training=True, rng_key=kdrop)
    )
    scaled = ref_eval * (1.0 / (1.0 - P_DROP))
    ok = jnp.all(
        jnp.isclose(out_train, 0.0, atol=1e-6)
        | jnp.isclose(out_train, scaled, atol=1e-5)
    )
    assert bool(ok), "train-mode dropout values inconsistent"

    print("KERNEL_OK")
</pallas_src>

<mosaic_0001>
module attributes {stable_mosaic.version = 11 : i64} {
  func.func @_pe_add_kernel(%arg0: i32, %arg1: memref<8x64xf32, #tpu.memory_space<vmem>>, %arg2: memref<8x32xf32, #tpu.memory_space<vmem>>, %arg3: memref<8x64xf32, #tpu.memory_space<vmem>>) attributes {dimension_semantics = [#tpu.dimension_semantics<parallel>], iteration_bounds = array<i64: 1>, scalar_prefetch = 0 : i64, scratch_operands = 0 : i64, tpu.core_type = #tpu.core_type<tc>, window_params = [{transform_indices = @transform_0, window_bounds = array<i64: 8, 64>}, {transform_indices = @transform_1, window_bounds = array<i64: 8, 32>}, {transform_indices = @transform_2, window_bounds = array<i64: 8, 64>}]} {
    %c0 = arith.constant 0 : index
    %c0_0 = arith.constant 0 : index
    %0 = vector.load %arg2[%c0, %c0_0] : memref<8x32xf32, #tpu.memory_space<vmem>>, vector<8x32xf32>
    %1 = tpu.concatenate %0, %0 in 1 : vector<8x32xf32>, vector<8x32xf32> -> vector<8x64xf32>
    %c0_1 = arith.constant 0 : index
    %c0_2 = arith.constant 0 : index
    %2 = vector.load %arg1[%c0_1, %c0_2] : memref<8x64xf32, #tpu.memory_space<vmem>>, vector<8x64xf32>
    %3 = arith.addf %2, %1 : vector<8x64xf32>
    %c0_3 = arith.constant 0 : index
    %c0_4 = arith.constant 0 : index
    %4 = vector.load %arg3[%c0_3, %c0_4] : memref<8x64xf32, #tpu.memory_space<vmem>>, vector<8x64xf32>
    tpu.vector_store %arg3[%c0_3, %c0_4], %3 {strides = array<i32>} : memref<8x64xf32, #tpu.memory_space<vmem>>, vector<8x64xf32>,
    return
  }
  func.func @transform_0(%arg0: i32) -> (i32, i32) {
    %c0_i32 = arith.constant 0 : i32
    %c0_i32_0 = arith.constant 0 : i32
    return %arg0, %c0_i32 : i32, i32
  }
  func.func @transform_1(%arg0: i32) -> (i32, i32) {
    %c0_i32 = arith.constant 0 : i32
    %c0_i32_0 = arith.constant 0 : i32
    return %arg0, %c0_i32 : i32, i32
  }
  func.func @transform_2(%arg0: i32) -> (i32, i32) {
    %c0_i32 = arith.constant 0 : i32
    %c0_i32_0 = arith.constant 0 : i32
    return %arg0, %c0_i32 : i32, i32
  }
}

</mosaic_0001>

<bundles_post_ra>
// kernel: tpu_custom_call.1
= control target key start
LH: loop header
LB: loop body
LE: loop exit
PB: predicated region body
PF: predicated region fallthrough
CT: control target
= control target key end

     0   :  { %s93_s0 = inlined_call_operand.vmem [shape: f32[8,64], index: 0, kind: input, shape index: {}]   ;;  %s94_s1 = inlined_call_operand.vmem [shape: f32[128,32], index: 1, kind: input, shape index: {}]   ;;  %s95_s2 = inlined_call_operand.hbm [shape: f32[8,64], index: 2, kind: output, shape index: {}]  }
   0x1   :  { %v12_v0 = vld [vmem:[%s94_s1] sm:$0xff] }
   0x2   :  { %7 = vsyncpa [#allocation3], 0  ;;  %s67_s11 = smov 32   ;;  %vm17_vm0 = vcmask 261120   ;;  %v19_v1 = vld [vmem:[%s93_s0] sm:$0xff]  ;;  %s68_s14 = smov [#allocation2]  }
   0x3   :  { %14 = vrot.lane.b32.xlu0 %v12_v0, %s67_s11  ;;  %s28_s15 = sshll.u32 %s68_s14, 4  ;;  %s30_s18 = sshll.u32 %s95_s2, 4  ;;  %vm21_vm1 = vcmask 523264   ;;  %s29_s15 = int_to_ptr.vmem [resolvable:$true] %s28_s15  ;;  %s31_s18 = int_to_ptr.hbm [resolvable:$true] %s30_s18 }
  0x75   :  { %v15_v2 = vpop.permute.xlu0 %14 }
  0x76   :  { %v18_v3 = vsel %vm17_vm0, %v12_v0, %v15_v2 }
  0x77   :  { %v20_v4 = vadd.f32 %v19_v1, %v18_v3 }
  0x79   :  { %22 = vst.msk [vmem:[#allocation2] sm:$0xff] %vm21_vm1, %v20_v4 }
  0x7a   :  { %33 = dma.vmem_to_hbm [thread:$0]  %s29_s15, 128, %s31_s18, [#allocation3]  }
  0x7b   :  { %65 = dma.done.wait [#allocation3], 128  }
  0x7c   :  { %66 = vsyncadd [#allocation3], 4294967168 }
  0x7d   :  { %38 = vsyncpa [#allocation3], 1 }

</bundles_post_ra>
